<compile_context>
chip_gen: v7x
topology: tpu7x:2x2x1
jax: 0.10.0
libtpu: 0.0.40
codegen_flags: <defaults>
</compile_context>

<pallas_src>
import jax
import jax.numpy as jnp
from jax import lax
from jax.experimental import pallas as pl
from jax.experimental.pallas import tpu as pltpu

NUM_FEATURES = 16
NUM_CLASSES = 5
HIDDEN = [64, 32, 32, 32]
BN_EPS = 1e-5
DEFAULT_TB = 8192  # batch-tile (lanes); multiple of 128


def jsc_s_kernel(x_ref,
                 bn0s_ref, bn0b_ref,
                 w1t_ref, b1_ref,
                 w2t_ref, b2_ref,
                 w3t_ref, b3_ref,
                 w4t_ref, b4_ref,
                 w5t_ref, b5_ref,
                 o_ref):
    # Input block: (TB, 16). BN(16) + ReLU applied in the (batch, feature)
    # layout, then contracted directly against W1^T (no explicit transpose of
    # the big activation).
    x = x_ref[...].astype(jnp.float32)
    x = jnp.maximum(x * bn0s_ref[...] + bn0b_ref[...], 0.0)

    # Layer 1 [BN(64) folded]: (64, TB) = W1^T(64,16) contracted with x(TB,16)
    # over the feature axis (NT matmul on the MXU).
    h = lax.dot_general(w1t_ref[...], x,
                        dimension_numbers=(((1,), (1,)), ((), ())),
                        preferred_element_type=jnp.float32)
    h = jnp.maximum(h + b1_ref[...], 0.0)

    # Layer 2: (32, TB)
    h = jnp.maximum(
        jnp.dot(w2t_ref[...], h, preferred_element_type=jnp.float32)
        + b2_ref[...], 0.0)
    # Layer 3: (32, TB)
    h = jnp.maximum(
        jnp.dot(w3t_ref[...], h, preferred_element_type=jnp.float32)
        + b3_ref[...], 0.0)
    # Layer 4: (32, TB)
    h = jnp.maximum(
        jnp.dot(w4t_ref[...], h, preferred_element_type=jnp.float32)
        + b4_ref[...], 0.0)
    # Layer 5 [BN(5) folded]: (5, TB)
    h = jnp.maximum(
        jnp.dot(w5t_ref[...], h, preferred_element_type=jnp.float32)
        + b5_ref[...], 0.0)

    o_ref[...] = h.astype(o_ref.dtype)  # lane-dense (5, TB) store


def _round_up(n, m):
    return ((n + m - 1) // m) * m


def _choose_tb(batch, tb_max):
    """Lane-aligned batch tile (multiple of 128).

    For large batches, cap the tile so the grid has >= ~8 steps: enough steps
    to amortize pipeline startup and to let dimension_semantics=("parallel",)
    shard the batch across both TensorCores on v7x.
    """
    tb = _round_up(max(batch // 8, 1), 128)
    return max(128, min(tb_max, tb))


def _const_spec(shape):
    """Whole array resident in VMEM; same block at every grid step."""
    nd = len(shape)
    return pl.BlockSpec(shape, lambda i, _nd=nd: (0,) * _nd)


def _fold_bn_into_linear(w, b, scale, shift):
    # (x @ w + b) * scale + shift == x @ (w * scale) + (b * scale + shift)
    return w * scale, b * scale + shift


def jsc_s_forward(x, params, *, tb=DEFAULT_TB):
    """x: (B, NUM_FEATURES) f32. Returns (B, NUM_CLASSES) f32."""
    B = x.shape[0]

    tb = _choose_tb(B, tb)
    b_pad = _round_up(B, tb)
    if b_pad != B:
        x = jnp.pad(x, ((0, b_pad - B), (0, 0)))

    # Fold BN1 -> (w1, b1), BN5 -> (w5, b5) in the wrapper (plain-JAX glue).
    w1, b1 = _fold_bn_into_linear(params["w1"], params["b1"],
                                  params["bn1_scale"], params["bn1_shift"])
    w5, b5 = _fold_bn_into_linear(params["w5"], params["b5"],
                                  params["bn5_scale"], params["bn5_shift"])

    def t(w):    # (in, out) -> (out, in) for the batch-on-lanes layout
        return w.T

    def col(b):  # (1, out) -> (out, 1) column bias (broadcast over lanes)
        return b.reshape(-1, 1)

    weight_args = (
        params["bn0_scale"], params["bn0_shift"],   # (1,16) row affines
        t(w1), col(b1),
        t(params["w2"]), col(params["b2"]),
        t(params["w3"]), col(params["b3"]),
        t(params["w4"]), col(params["b4"]),
        t(w5), col(b5),
    )

    grid = (b_pad // tb,)
    out_t = pl.pallas_call(
        jsc_s_kernel,
        out_shape=jax.ShapeDtypeStruct((NUM_CLASSES, b_pad), jnp.float32),
        grid=grid,
        in_specs=[pl.BlockSpec((tb, NUM_FEATURES), lambda i: (i, 0))]
                 + [_const_spec(a.shape) for a in weight_args],
        out_specs=pl.BlockSpec((NUM_CLASSES, tb), lambda i: (0, i)),
        compiler_params=pltpu.CompilerParams(
            dimension_semantics=("parallel",),
            vmem_limit_bytes=48 * 1024 * 1024),
    )(x, *weight_args)

    # (5, b_pad) -> (B, 5): tiny wrapper-side transpose (~20 B/row of XLA
    # traffic), negligible vs. the kernel.
    return out_t[:, :B].T


def fold_bn(gamma, beta, mean, var, eps=BN_EPS):
    scale = gamma / jnp.sqrt(var + eps)
    shift = beta - mean * scale
    return scale.reshape(1, -1), shift.reshape(1, -1)


def init_params(key):
    dims = [NUM_FEATURES] + HIDDEN + [NUM_CLASSES]
    keys = jax.random.split(key, 32)
    ki = iter(range(32))
    p = {}

    def linear(in_f, out_f):
        bound = 1.0 / jnp.sqrt(jnp.float32(in_f))
        w = jax.random.uniform(keys[next(ki)], (in_f, out_f), jnp.float32,
                               minval=-bound, maxval=bound)
        b = jax.random.uniform(keys[next(ki)], (1, out_f), jnp.float32,
                               minval=-bound, maxval=bound)
        return w, b

    def bn(n):
        gamma = 1.0 + 0.05 * jax.random.normal(keys[next(ki)], (n,), jnp.float32)
        beta = 0.05 * jax.random.normal(keys[next(ki)], (n,), jnp.float32)
        mean = 0.1 * jax.random.normal(keys[next(ki)], (n,), jnp.float32)
        var = 1.0 + 0.1 * jax.random.uniform(keys[next(ki)], (n,), jnp.float32)
        return fold_bn(gamma, beta, mean, var)

    p["bn0_scale"], p["bn0_shift"] = bn(dims[0])
    p["w1"], p["b1"] = linear(dims[0], dims[1])
    p["bn1_scale"], p["bn1_shift"] = bn(dims[1])
    p["w2"], p["b2"] = linear(dims[1], dims[2])
    p["w3"], p["b3"] = linear(dims[2], dims[3])
    p["w4"], p["b4"] = linear(dims[3], dims[4])
    p["w5"], p["b5"] = linear(dims[4], dims[5])
    p["bn5_scale"], p["bn5_shift"] = bn(dims[5])
    return p


def jsc_s_reference(x, p):
    # Un-folded, un-transposed reference: mirrors the PyTorch layer order.
    h = jnp.maximum(x * p["bn0_scale"] + p["bn0_shift"], 0.0)
    h = jnp.maximum((h @ p["w1"] + p["b1"]) * p["bn1_scale"] + p["bn1_shift"], 0.0)
    h = jnp.maximum(h @ p["w2"] + p["b2"], 0.0)
    h = jnp.maximum(h @ p["w3"] + p["b3"], 0.0)
    h = jnp.maximum(h @ p["w4"] + p["b4"], 0.0)
    h = jnp.maximum((h @ p["w5"] + p["b5"]) * p["bn5_scale"] + p["bn5_shift"], 0.0)
    return h


if __name__ == "__main__":
    key = jax.random.PRNGKey(0)
    k_x, k_p, k_x2 = jax.random.split(key, 3)
    params = init_params(k_p)

    # Small case: single grid step, padded batch.
    B1 = 8
    x1 = jax.random.normal(k_x, (B1, NUM_FEATURES), jnp.float32)
    out1 = jax.block_until_ready(jsc_s_forward(x1, params))
    ref1 = jsc_s_reference(x1, params)
    assert out1.shape == (B1, NUM_CLASSES)
    assert jnp.allclose(out1, ref1, atol=1e-4, rtol=1e-4), "mismatch (B=8)"

    # Multi-step case: exercises the batch grid, padding and lane-dense stores.
    B2 = 300
    x2 = jax.random.normal(k_x2, (B2, NUM_FEATURES), jnp.float32)
    out2 = jax.block_until_ready(jsc_s_forward(x2, params, tb=128))
    ref2 = jsc_s_reference(x2, params)
    assert out2.shape == (B2, NUM_CLASSES)
    assert jnp.allclose(out2, ref2, atol=1e-4, rtol=1e-4), "mismatch (B=300)"

    print("KERNEL_OK")
</pallas_src>

<mosaic_0001>
module attributes {stable_mosaic.version = 11 : i64} {
  func.func @jsc_s_kernel(%arg0: i32, %arg1: memref<128x16xf32, #tpu.memory_space<vmem>>, %arg2: memref<1x16xf32, #tpu.memory_space<vmem>>, %arg3: memref<1x16xf32, #tpu.memory_space<vmem>>, %arg4: memref<64x16xf32, #tpu.memory_space<vmem>>, %arg5: memref<64x1xf32, #tpu.memory_space<vmem>>, %arg6: memref<32x64xf32, #tpu.memory_space<vmem>>, %arg7: memref<32x1xf32, #tpu.memory_space<vmem>>, %arg8: memref<32x32xf32, #tpu.memory_space<vmem>>, %arg9: memref<32x1xf32, #tpu.memory_space<vmem>>, %arg10: memref<32x32xf32, #tpu.memory_space<vmem>>, %arg11: memref<32x1xf32, #tpu.memory_space<vmem>>, %arg12: memref<5x32xf32, #tpu.memory_space<vmem>>, %arg13: memref<5x1xf32, #tpu.memory_space<vmem>>, %arg14: memref<5x128xf32, #tpu.memory_space<vmem>>) attributes {dimension_semantics = [#tpu.dimension_semantics<parallel>], iteration_bounds = array<i64: 1>, scalar_prefetch = 0 : i64, scratch_operands = 0 : i64, tpu.core_type = #tpu.core_type<tc>, window_params = [{transform_indices = @transform_0, window_bounds = array<i64: 128, 16>}, {pipeline_mode = #tpu.pipeline_mode<synchronous>, transform_indices = @transform_1, window_bounds = array<i64: 1, 16>}, {pipeline_mode = #tpu.pipeline_mode<synchronous>, transform_indices = @transform_2, window_bounds = array<i64: 1, 16>}, {pipeline_mode = #tpu.pipeline_mode<synchronous>, transform_indices = @transform_3, window_bounds = array<i64: 64, 16>}, {pipeline_mode = #tpu.pipeline_mode<synchronous>, transform_indices = @transform_4, window_bounds = array<i64: 64, 1>}, {pipeline_mode = #tpu.pipeline_mode<synchronous>, transform_indices = @transform_5, window_bounds = array<i64: 32, 64>}, {pipeline_mode = #tpu.pipeline_mode<synchronous>, transform_indices = @transform_6, window_bounds = array<i64: 32, 1>}, {pipeline_mode = #tpu.pipeline_mode<synchronous>, transform_indices = @transform_7, window_bounds = array<i64: 32, 32>}, {pipeline_mode = #tpu.pipeline_mode<synchronous>, transform_indices = @transform_8, window_bounds = array<i64: 32, 1>}, {pipeline_mode = #tpu.pipeline_mode<synchronous>, transform_indices = @transform_9, window_bounds = array<i64: 32, 32>}, {pipeline_mode = #tpu.pipeline_mode<synchronous>, transform_indices = @transform_10, window_bounds = array<i64: 32, 1>}, {pipeline_mode = #tpu.pipeline_mode<synchronous>, transform_indices = @transform_11, window_bounds = array<i64: 5, 32>}, {pipeline_mode = #tpu.pipeline_mode<synchronous>, transform_indices = @transform_12, window_bounds = array<i64: 5, 1>}, {transform_indices = @transform_13, window_bounds = array<i64: 5, 128>}]} {
    %c0 = arith.constant 0 : index
    %c0_0 = arith.constant 0 : index
    %0 = vector.load %arg1[%c0, %c0_0] : memref<128x16xf32, #tpu.memory_space<vmem>>, vector<128x16xf32>
    %c0_1 = arith.constant 0 : index
    %c0_2 = arith.constant 0 : index
    %1 = vector.load %arg2[%c0_1, %c0_2] : memref<1x16xf32, #tpu.memory_space<vmem>>, vector<1x16xf32>
    %2 = vector.broadcast %1 : vector<1x16xf32> to vector<128x16xf32>
    %3 = arith.mulf %0, %2 : vector<128x16xf32>
    %c0_3 = arith.constant 0 : index
    %c0_4 = arith.constant 0 : index
    %4 = vector.load %arg3[%c0_3, %c0_4] : memref<1x16xf32, #tpu.memory_space<vmem>>, vector<1x16xf32>
    %5 = vector.broadcast %4 : vector<1x16xf32> to vector<128x16xf32>
    %6 = arith.addf %3, %5 : vector<128x16xf32>
    %cst = arith.constant 0.000000e+00 : f32
    %7 = vector.broadcast %cst : f32 to vector<128x16xf32>
    %8 = arith.maximumf %6, %7 : vector<128x16xf32>
    %c0_5 = arith.constant 0 : index
    %c0_6 = arith.constant 0 : index
    %9 = vector.load %arg4[%c0_5, %c0_6] : memref<64x16xf32, #tpu.memory_space<vmem>>, vector<64x16xf32>
    %cst_7 = arith.constant dense<0.000000e+00> : vector<64x128xf32>
    %10 = tpu.matmul %9, %8, %cst_7 {dimension_numbers = #tpu.dot_dimension_numbers<[1], [1], [0], [0], [0, 0, 1, 0], [], []>} : vector<64x16xf32>, vector<128x16xf32>, vector<64x128xf32> -> vector<64x128xf32>
    %c0_8 = arith.constant 0 : index
    %c0_9 = arith.constant 0 : index
    %11 = vector.load %arg5[%c0_8, %c0_9] : memref<64x1xf32, #tpu.memory_space<vmem>>, vector<64x1xf32>
    %12 = vector.broadcast %11 : vector<64x1xf32> to vector<64x128xf32>
    %13 = arith.addf %10, %12 : vector<64x128xf32>
    %cst_10 = arith.constant 0.000000e+00 : f32
    %14 = vector.broadcast %cst_10 : f32 to vector<64x128xf32>
    %15 = arith.maximumf %13, %14 : vector<64x128xf32>
    %c0_11 = arith.constant 0 : index
    %c0_12 = arith.constant 0 : index
    %16 = vector.load %arg6[%c0_11, %c0_12] : memref<32x64xf32, #tpu.memory_space<vmem>>, vector<32x64xf32>
    %cst_13 = arith.constant dense<0.000000e+00> : vector<32x128xf32>
    %17 = tpu.matmul %16, %15, %cst_13 {dimension_numbers = #tpu.dot_dimension_numbers<[1], [0], [0], [1], [0, 0, 1, 1], [], []>} : vector<32x64xf32>, vector<64x128xf32>, vector<32x128xf32> -> vector<32x128xf32>
    %c0_14 = arith.constant 0 : index
    %c0_15 = arith.constant 0 : index
    %18 = vector.load %arg7[%c0_14, %c0_15] : memref<32x1xf32, #tpu.memory_space<vmem>>, vector<32x1xf32>
    %19 = vector.broadcast %18 : vector<32x1xf32> to vector<32x128xf32>
    %20 = arith.addf %17, %19 : vector<32x128xf32>
    %cst_16 = arith.constant 0.000000e+00 : f32
    %21 = vector.broadcast %cst_16 : f32 to vector<32x128xf32>
    %22 = arith.maximumf %20, %21 : vector<32x128xf32>
    %c0_17 = arith.constant 0 : index
    %c0_18 = arith.constant 0 : index
    %23 = vector.load %arg8[%c0_17, %c0_18] : memref<32x32xf32, #tpu.memory_space<vmem>>, vector<32x32xf32>
    %cst_19 = arith.constant dense<0.000000e+00> : vector<32x128xf32>
    %24 = tpu.matmul %23, %22, %cst_19 {dimension_numbers = #tpu.dot_dimension_numbers<[1], [0], [0], [1], [0, 0, 1, 1], [], []>} : vector<32x32xf32>, vector<32x128xf32>, vector<32x128xf32> -> vector<32x128xf32>
    %c0_20 = arith.constant 0 : index
    %c0_21 = arith.constant 0 : index
    %25 = vector.load %arg9[%c0_20, %c0_21] : memref<32x1xf32, #tpu.memory_space<vmem>>, vector<32x1xf32>
    %26 = vector.broadcast %25 : vector<32x1xf32> to vector<32x128xf32>
    %27 = arith.addf %24, %26 : vector<32x128xf32>
    %cst_22 = arith.constant 0.000000e+00 : f32
    %28 = vector.broadcast %cst_22 : f32 to vector<32x128xf32>
    %29 = arith.maximumf %27, %28 : vector<32x128xf32>
    %c0_23 = arith.constant 0 : index
    %c0_24 = arith.constant 0 : index
    %30 = vector.load %arg10[%c0_23, %c0_24] : memref<32x32xf32, #tpu.memory_space<vmem>>, vector<32x32xf32>
    %cst_25 = arith.constant dense<0.000000e+00> : vector<32x128xf32>
    %31 = tpu.matmul %30, %29, %cst_25 {dimension_numbers = #tpu.dot_dimension_numbers<[1], [0], [0], [1], [0, 0, 1, 1], [], []>} : vector<32x32xf32>, vector<32x128xf32>, vector<32x128xf32> -> vector<32x128xf32>
    %c0_26 = arith.constant 0 : index
    %c0_27 = arith.constant 0 : index
    %32 = vector.load %arg11[%c0_26, %c0_27] : memref<32x1xf32, #tpu.memory_space<vmem>>, vector<32x1xf32>
    %33 = vector.broadcast %32 : vector<32x1xf32> to vector<32x128xf32>
    %34 = arith.addf %31, %33 : vector<32x128xf32>
    %cst_28 = arith.constant 0.000000e+00 : f32
    %35 = vector.broadcast %cst_28 : f32 to vector<32x128xf32>
    %36 = arith.maximumf %34, %35 : vector<32x128xf32>
    %c0_29 = arith.constant 0 : index
    %c0_30 = arith.constant 0 : index
    %37 = vector.load %arg12[%c0_29, %c0_30] : memref<5x32xf32, #tpu.memory_space<vmem>>, vector<5x32xf32>
    %cst_31 = arith.constant dense<0.000000e+00> : vector<5x128xf32>
    %38 = tpu.matmul %37, %36, %cst_31 {dimension_numbers = #tpu.dot_dimension_numbers<[1], [0], [0], [1], [0, 0, 1, 1], [], []>} : vector<5x32xf32>, vector<32x128xf32>, vector<5x128xf32> -> vector<5x128xf32>
    %c0_32 = arith.constant 0 : index
    %c0_33 = arith.constant 0 : index
    %39 = vector.load %arg13[%c0_32, %c0_33] : memref<5x1xf32, #tpu.memory_space<vmem>>, vector<5x1xf32>
    %40 = vector.broadcast %39 : vector<5x1xf32> to vector<5x128xf32>
    %41 = arith.addf %38, %40 : vector<5x128xf32>
    %cst_34 = arith.constant 0.000000e+00 : f32
    %42 = vector.broadcast %cst_34 : f32 to vector<5x128xf32>
    %43 = arith.maximumf %41, %42 : vector<5x128xf32>
    %c0_35 = arith.constant 0 : index
    %c0_36 = arith.constant 0 : index
    %44 = vector.load %arg14[%c0_35, %c0_36] : memref<5x128xf32, #tpu.memory_space<vmem>>, vector<5x128xf32>
    tpu.vector_store %arg14[%c0_35, %c0_36], %43 {strides = array<i32>} : memref<5x128xf32, #tpu.memory_space<vmem>>, vector<5x128xf32>,
    return
  }
  func.func @transform_0(%arg0: i32) -> (i32, i32) {
    %c0_i32 = arith.constant 0 : i32
    %c0_i32_0 = arith.constant 0 : i32
    return %arg0, %c0_i32 : i32, i32
  }
  func.func @transform_1(%arg0: i32) -> (i32, i32) {
    %c0_i32 = arith.constant 0 : i32
    %c0_i32_0 = arith.constant 0 : i32
    %c0_i32_1 = arith.constant 0 : i32
    return %c0_i32, %c0_i32_0 : i32, i32
  }
  func.func @transform_2(%arg0: i32) -> (i32, i32) {
    %c0_i32 = arith.constant 0 : i32
    %c0_i32_0 = arith.constant 0 : i32
    %c0_i32_1 = arith.constant 0 : i32
    return %c0_i32, %c0_i32_0 : i32, i32
  }
  func.func @transform_3(%arg0: i32) -> (i32, i32) {
    %c0_i32 = arith.constant 0 : i32
    %c0_i32_0 = arith.constant 0 : i32
    %c0_i32_1 = arith.constant 0 : i32
    return %c0_i32, %c0_i32_0 : i32, i32
  }
  func.func @transform_4(%arg0: i32) -> (i32, i32) {
    %c0_i32 = arith.constant 0 : i32
    %c0_i32_0 = arith.constant 0 : i32
    %c0_i32_1 = arith.constant 0 : i32
    return %c0_i32, %c0_i32_0 : i32, i32
  }
  func.func @transform_5(%arg0: i32) -> (i32, i32) {
    %c0_i32 = arith.constant 0 : i32
    %c0_i32_0 = arith.constant 0 : i32
    %c0_i32_1 = arith.constant 0 : i32
    return %c0_i32, %c0_i32_0 : i32, i32
  }
  func.func @transform_6(%arg0: i32) -> (i32, i32) {
    %c0_i32 = arith.constant 0 : i32
    %c0_i32_0 = arith.constant 0 : i32
    %c0_i32_1 = arith.constant 0 : i32
    return %c0_i32, %c0_i32_0 : i32, i32
  }
  func.func @transform_7(%arg0: i32) -> (i32, i32) {
    %c0_i32 = arith.constant 0 : i32
    %c0_i32_0 = arith.constant 0 : i32
    %c0_i32_1 = arith.constant 0 : i32
    return %c0_i32, %c0_i32_0 : i32, i32
  }
  func.func @transform_8(%arg0: i32) -> (i32, i32) {
    %c0_i32 = arith.constant 0 : i32
    %c0_i32_0 = arith.constant 0 : i32
    %c0_i32_1 = arith.constant 0 : i32
    return %c0_i32, %c0_i32_0 : i32, i32
  }
  func.func @transform_9(%arg0: i32) -> (i32, i32) {
    %c0_i32 = arith.constant 0 : i32
    %c0_i32_0 = arith.constant 0 : i32
    %c0_i32_1 = arith.constant 0 : i32
    return %c0_i32, %c0_i32_0 : i32, i32
  }
  func.func @transform_10(%arg0: i32) -> (i32, i32) {
    %c0_i32 = arith.constant 0 : i32
    %c0_i32_0 = arith.constant 0 : i32
    %c0_i32_1 = arith.constant 0 : i32
    return %c0_i32, %c0_i32_0 : i32, i32
  }
  func.func @transform_11(%arg0: i32) -> (i32, i32) {
    %c0_i32 = arith.constant 0 : i32
    %c0_i32_0 = arith.constant 0 : i32
    %c0_i32_1 = arith.constant 0 : i32
    return %c0_i32, %c0_i32_0 : i32, i32
  }
  func.func @transform_12(%arg0: i32) -> (i32, i32) {
    %c0_i32 = arith.constant 0 : i32
    %c0_i32_0 = arith.constant 0 : i32
    %c0_i32_1 = arith.constant 0 : i32
    return %c0_i32, %c0_i32_0 : i32, i32
  }
  func.func @transform_13(%arg0: i32) -> (i32, i32) {
    %c0_i32 = arith.constant 0 : i32
    %c0_i32_0 = arith.constant 0 : i32
    return %c0_i32, %arg0 : i32, i32
  }
}

</mosaic_0001>

<bundles_post_ra>
// kernel: tpu_custom_call.1
= control target key start
LH: loop header
LB: loop body
LE: loop exit
PB: predicated region body
PF: predicated region fallthrough
CT: control target
= control target key end

     0   :  { %v1168_v7 = vmov 0   ;;  %vm179_vm0 = vcmask 130048   ;;  %s1530_s0 = inlined_call_operand.vmem [shape: f32[128,16], index: 0, kind: input, shape index: {}]   ;;  %s1531_s1 = inlined_call_operand.vmem [shape: f32[1,16], index: 1, kind: input, shape index: {}]   ;;  %s1532_s2 = inlined_call_operand.vmem [shape: f32[1,16], index: 2, kind: input, shape index: {}]   ;;  %s1533_s3 = inlined_call_operand.vmem [shape: f32[64,16], index: 3, kind: input, shape index: {}]   ;;  %s1534_s4 = inlined_call_operand.vmem [shape: f32[64,1], index: 4, kind: input, shape index: {}]   ;;  %s1535_s5 = inlined_call_operand.vmem [shape: f32[32,64], index: 5, kind: input, shape index: {}]   ;;  %s1536_s6 = inlined_call_operand.vmem [shape: f32[32,1], index: 6, kind: input, shape index: {}]   ;;  %s1537_s7 = inlined_call_operand.vmem [shape: f32[32,32], index: 7, kind: input, shape index: {}]   ;;  %s1538_s8 = inlined_call_operand.vmem [shape: f32[32,1], index: 8, kind: input, shape index: {}]   ;;  %s1539_s9 = inlined_call_operand.vmem [shape: f32[32,32], index: 9, kind: input, shape index: {}]   ;;  %s1540_s10 = inlined_call_operand.vmem [shape: f32[32,1], index: 10, kind: input, shape index: {}]   ;;  %s1541_s11 = inlined_call_operand.vmem [shape: f32[5,32], index: 11, kind: input, shape index: {}]   ;;  %s1542_s12 = inlined_call_operand.vmem [shape: f32[5,1], index: 12, kind: input, shape index: {}]   ;;  %s1543_s13 = inlined_call_operand.hbm [shape: f32[5,128], index: 13, kind: output, shape index: {}]  }
   0x1   :  { %v45_v0 = vld [vmem:[%s1530_s0] sm:$0xff]  ;;  %v46_v1 = vld [vmem:[%s1530_s0 + $0x8] sm:$0xff]  ;;  %v47_v6 = vld [vmem:[%s1530_s0 + $0x10] sm:$0xff]  ;;  %1142 = vset.pattern.permute.xlu0 %v1168_v7  ;;  %1143 = vset.pattern.permute.xlu1 %v1168_v7 }
   0x2   :  { %v1252_v2 = vld [vmem:[%s1531_s1] ss:$0 sm:$0xff]  ;;  %v48_v8 = vld [vmem:[%s1530_s0 + $0x18] sm:$0xff]  ;;  %v50_v11 = vld [vmem:[%s1530_s0 + $0x28] sm:$0xff] }
   0x3   :  { %v68_v3 = vmul.f32 %v1252_v2, %v45_v0  ;;  %v69_v4 = vmul.f32 %v1252_v2, %v46_v1  ;;  %v1259_v5 = vld [vmem:[%s1532_s2] ss:$0 sm:$0xff]  ;;  %v70_v9 = vmul.f32 %v1252_v2, %v47_v6  ;;  %v71_v14 = vmul.f32 %v1252_v2, %v48_v8  ;;  %vm1283_vm1 = vmpackc.low %vm179_vm0, %vm179_vm0  ;;  %v51_v28 = vld [vmem:[%s1530_s0 + $0x30] sm:$0xff] }
   0x4   :  { %v49_v10 = vld [vmem:[%s1530_s0 + $0x20] sm:$0xff]  ;;  %v73_v17 = vmul.f32 %v1252_v2, %v50_v11  ;;  %v52_v29 = vld [vmem:[%s1530_s0 + $0x38] sm:$0xff]  ;;  %v133_v32 = vld [vmem:[%s1534_s4 + $0x10] sm:$0xff]  ;;  %v74_v35 = vmul.f32 %v1252_v2, %v51_v28 }
   0x5   :  { %v91_v12 = vadd.f32 %v1259_v5, %v68_v3  ;;  %v92_v13 = vadd.f32 %v1259_v5, %v69_v4  ;;  %v72_v15 = vmul.f32 %v1252_v2, %v49_v10  ;;  %v93_v16 = vadd.f32 %v1259_v5, %v70_v9  ;;  %v123_v23 = vld [vmem:[%s1533_s3] sm:$0xff]  ;;  %v132_v37 = vld [vmem:[%s1534_s4 + $0x8] sm:$0xff]  ;;  %151 = vperm.xlu1 %1143, %v133_v32   ;;  %v134_v38 = vld [vmem:[%s1534_s4 + $0x18] sm:$0xff] }
   0x6   :  { %v94_v20 = vadd.f32 %v1259_v5, %v71_v14  ;;  %v96_v27 = vadd.f32 %v1259_v5, %v73_v17  ;;  %978 = vmatprep.mubr.msk.f32.mxu0 %vm179_vm0, %v123_v23  ;;  %v131_v31 = vld [vmem:[%s1534_s4] sm:$0xff]  ;;  %v75_v36 = vmul.f32 %v1252_v2, %v52_v29  ;;  %v97_v40 = vadd.f32 %v1259_v5, %v74_v35  ;;  %v54_v43 = vld [vmem:[%s1530_s0 + $0x48] sm:$0xff] }
   0x7   :  { %v107_v18 = vmax.f32 %v91_v12, 0.0  ;;  %v108_v19 = vmax.f32 %v92_v13, 0.0  ;;  %v109_v22 = vmax.f32 %v93_v16, 0.0  ;;  %v95_v26 = vadd.f32 %v1259_v5, %v72_v15  ;;  %141 = vperm.xlu0 %1142, %v131_v31   ;;  %v53_v42 = vld [vmem:[%s1530_s0 + $0x40] sm:$0xff] }
   0x8   :  { %v110_v25 = vmax.f32 %v94_v20, 0.0  ;;  %v112_v34 = vmax.f32 %v96_v27, 0.0  ;;  %v98_v41 = vadd.f32 %v1259_v5, %v75_v36  ;;  %v135_v44 = vld [vmem:[%s1534_s4 + $0x20] sm:$0xff] }
   0x9   :  { %v1051_v24 = vpack.c.bf16 %v108_v19, %v107_v18  ;;  %v111_v33 = vmax.f32 %v95_v26, 0.0  ;;  %156 = vperm.xlu1 %1143, %v134_v38  }
   0xa   :  { %v1057_v30 = vpack.c.bf16 %v110_v25, %v109_v22 }
   0xb   :  { %1053 = vmatprep.subr.msk.bf16.mxu0 %vm1283_vm1, %v1051_v24  ;;  %v1063_v39 = vpack.c.bf16 %v112_v34, %v111_v33  ;;  %146 = vperm.xlu0 %1142, %v132_v37  }
   0xc   :  { %1056 = vmatpush3.bf16.xpose.msk.msra.mxu0 %vm1283_vm1, %v1051_v24 }
   0xd   :  { %1059 = vmatprep.subr.msk.bf16.mxu0 %vm1283_vm1, %v1057_v30 }
   0xe   :  { %18 = vsyncpa [#allocation3], 0  ;;  %v136_v45 = vld [vmem:[%s1534_s4 + $0x28] sm:$0xff]  ;;  %v113_v46 = vmax.f32 %v97_v40, 0.0  ;;  %v114_v47 = vmax.f32 %v98_v41, 0.0  ;;  %v76_v48 = vmul.f32 %v1252_v2, %v53_v42  ;;  %v77_v49 = vmul.f32 %v1252_v2, %v54_v43  ;;  %v137_v50 = vld [vmem:[%s1534_s4 + $0x30] sm:$0xff] }
   0xf   :  { %161 = vperm.xlu0 %1142, %v135_v44   ;;  %166 = vperm.xlu1 %1143, %v136_v45   ;;  %v138_v51 = vld [vmem:[%s1534_s4 + $0x38] sm:$0xff]  ;;  %v55_v55 = vld [vmem:[%s1530_s0 + $0x50] sm:$0xff]  ;;  %v369_v57 = vld [vmem:[%s1536_s6] sm:$0xff]  ;;  %vm393_vm2 = vcmask 523264   ;;  %vm523_vm3 = vcmask 261120   ;;  %vm1170_vm4 = vmmov 0  }
  0x10   :  { %v1069_v52 = vpack.c.bf16 %v114_v47, %v113_v46  ;;  %v99_v53 = vadd.f32 %v1259_v5, %v76_v48  ;;  %v100_v54 = vadd.f32 %v1259_v5, %v77_v49  ;;  %v56_v56 = vld [vmem:[%s1530_s0 + $0x58] sm:$0xff]  ;;  %v370_v58 = vld [vmem:[%s1536_s6 + $0x8] sm:$0xff]  ;;  %v78_v61 = vmul.f32 %v1252_v2, %v55_v55  ;;  %v371_v63 = vld [vmem:[%s1536_s6 + $0x10] sm:$0xff]  ;;  %s1172_s15 = smov [#allocation2]  }
  0x11   :  { %v79_v62 = vmul.f32 %v1252_v2, %v56_v56  ;;  %v372_v0 = vld [vmem:[%s1536_s6 + $0x18] sm:$0xff]  ;;  %v57_v6 = vld [vmem:[%s1530_s0 + $0x60] sm:$0xff]  ;;  %v58_v7 = vld [vmem:[%s1530_s0 + $0x68] sm:$0xff]  ;;  %s842_s16 = sshll.u32 %s1172_s15, 4  ;;  %s843_s16 = int_to_ptr.vmem [resolvable:$true] %s842_s16 }
  0x12   :  { %v115_v59 = vmax.f32 %v99_v53, 0.0  ;;  %v116_v60 = vmax.f32 %v100_v54, 0.0  ;;  %v101_v3 = vadd.f32 %v1259_v5, %v78_v61  ;;  %v499_v8 = vld [vmem:[%s1538_s8] sm:$0xff]  ;;  %v500_v9 = vld [vmem:[%s1538_s8 + $0x8] sm:$0xff]  ;;  %v80_v12 = vmul.f32 %v1252_v2, %v57_v6  ;;  %v501_v14 = vld [vmem:[%s1538_s8 + $0x10] sm:$0xff]  ;;  %s1144_s17 = scalar_lea.vmem %s843_s16, 128  ;;  %p1149_p1 = scmp.lt.s32.totalorder %s843_s16, %s843_s16 }
  0x13   :  { %171 = vperm.xlu0 %1142, %v137_v50   ;;  %176 = vperm.xlu1 %1143, %v138_v51   ;;  %v102_v4 = vadd.f32 %v1259_v5, %v79_v62  ;;  %v81_v13 = vmul.f32 %v1252_v2, %v58_v7  ;;  %v502_v15 = vld [vmem:[%s1538_s8 + $0x18] sm:$0xff]  ;;  %v59_v19 = vld [vmem:[%s1530_s0 + $0x70] sm:$0xff]  ;;  %v629_v22 = vld [vmem:[%s1540_s10] sm:$0xff]  ;;  %p1145_p0 = scmp.ne.s32.totalorder %s843_s16, %s1144_s17  ;;  %p1150_p2 = scmp.lt.s32.totalorder %s1144_s17, %s1144_s17 }
  0x14   :  { %1062 = vmatpush3.bf16.xpose.msk.msra.mxu0 %vm1283_vm1, %v1057_v30  ;;  %v1075_v1 = vpack.c.bf16 %v116_v60, %v115_v59  ;;  %v117_v10 = vmax.f32 %v101_v3, 0.0  ;;  %v103_v17 = vadd.f32 %v1259_v5, %v80_v12  ;;  %v60_v20 = vld [vmem:[%s1530_s0 + $0x78] sm:$0xff]  ;;  %v630_v23 = vld [vmem:[%s1540_s10 + $0x8] sm:$0xff]  ;;  %v82_v26 = vmul.f32 %v1252_v2, %v59_v19  ;;  %v631_v28 = vld [vmem:[%s1540_s10 + $0x10] sm:$0xff] }
  0x15   :  { %1065 = vmatprep.subr.msk.bf16.mxu0 %vm1283_vm1, %v1063_v39  ;;  %v118_v11 = vmax.f32 %v102_v4, 0.0  ;;  %v104_v18 = vadd.f32 %v1259_v5, %v81_v13  ;;  %v83_v27 = vmul.f32 %v1252_v2, %v60_v20  ;;  %v632_v29 = vld [vmem:[%s1540_s10 + $0x18] sm:$0xff]  ;;  %v755_v2 = vld [vmem:[%s1542_s12] sm:$0x1f]  ;;  %v125_v36 = vld [vmem:[%s1533_s3 + $0x10] sm:$0xff]  ;;  %p1151_p3 = por %p1150_p2, %p1149_p1 }
  0x16   :  { %v119_v24 = vmax.f32 %v103_v17, 0.0  ;;  %v105_v31 = vadd.f32 %v1259_v5, %v82_v26  ;;  %v126_v37 = vld [vmem:[%s1533_s3 + $0x18] sm:$0xff]  ;;  %v127_v21 = vld [vmem:[%s1533_s3 + $0x20] sm:$0xff]  ;;  %v128_v38 = vld [vmem:[%s1533_s3 + $0x28] sm:$0xff] }
  0x17   :  { %375 = vperm.xlu0 %1142, %v369_v57   ;;  %380 = vperm.xlu1 %1143, %v370_v58   ;;  %v1081_v16 = vpack.c.bf16 %v118_v11, %v117_v10  ;;  %v120_v25 = vmax.f32 %v104_v18, 0.0  ;;  %v106_v32 = vadd.f32 %v1259_v5, %v83_v27  ;;  %v124_v5 = vld [vmem:[%s1533_s3 + $0x8] sm:$0xff]  ;;  %v130_v40 = vld [vmem:[%s1533_s3 + $0x38] sm:$0xff]  ;;  %v365_v41 = vld [vmem:[%s1535_s5] sm:$0xff]  ;;  %p1152_p4 = pnand %p1151_p3, %p1145_p0 }
  0x18   :  { %v121_v33 = vmax.f32 %v105_v31, 0.0  ;;  %1006 = vmatprep.mubr.msk.f32.mxu1 %vm393_vm2, %v365_v41  ;;  %v367_v17 = vld [vmem:[%s1535_s5 + $0x10] sm:$0xff]  ;;  %v368_v18 = vld [vmem:[%s1535_s5 + $0x18] sm:$0xff]  ;;  %v495_v19 = vld [vmem:[%s1537_s7] sm:$0xff] }
  0x19   :  { %v1087_v30 = vpack.c.bf16 %v120_v25, %v119_v24  ;;  %v122_v34 = vmax.f32 %v106_v32, 0.0 }
  0x1b   :  { %385 = vperm.xlu0 %1142, %v371_v63   ;;  %390 = vperm.xlu1 %1143, %v372_v0   ;;  %v1093_v35 = vpack.c.bf16 %v122_v34, %v121_v33 }
  0x1c   :  { %1068 = vmatpush3.bf16.xpose.msk.msra.mxu0 %vm1283_vm1, %v1063_v39  ;;  %v129_v39 = vld [vmem:[%s1533_s3 + $0x30] sm:$0xff] }
  0x1d   :  { %1071 = vmatprep.subr.msk.bf16.mxu0 %vm1283_vm1, %v1069_v52 }
  0x1f   :  { %505 = vperm.xlu0 %1142, %v499_v8   ;;  %510 = vperm.xlu1 %1143, %v500_v9  }
  0x23   :  { %515 = vperm.xlu0 %1142, %v501_v14   ;;  %520 = vperm.xlu1 %1143, %v502_v15  }
  0x24   :  { %1074 = vmatpush3.bf16.xpose.msk.msra.mxu0 %vm1283_vm1, %v1069_v52 }
  0x25   :  { %1077 = vmatprep.subr.msk.bf16.mxu0 %vm1283_vm1, %v1075_v1 }
  0x27   :  { %635 = vperm.xlu0 %1142, %v629_v22   ;;  %640 = vperm.xlu1 %1143, %v630_v23  }
  0x2b   :  { %645 = vperm.xlu0 %1142, %v631_v28   ;;  %650 = vperm.xlu1 %1143, %v632_v29  }
  0x2c   :  { %1080 = vmatpush3.bf16.xpose.msk.msra.mxu0 %vm1283_vm1, %v1075_v1 }
  0x2d   :  { %1083 = vmatprep.subr.msk.bf16.mxu0 %vm1283_vm1, %v1081_v16 }
  0x2f   :  { %758 = vperm.xlu0 %1142, %v755_v2  }
  0x34   :  { %1086 = vmatpush3.bf16.xpose.msk.msra.mxu0 %vm1283_vm1, %v1081_v16  ;;  %v366_v16 = vld [vmem:[%s1535_s5 + $0x8] sm:$0xff] }
  0x35   :  { %1089 = vmatprep.subr.msk.bf16.mxu0 %vm1283_vm1, %v1087_v30 }
  0x3c   :  { %1092 = vmatpush3.bf16.xpose.msk.msra.mxu0 %vm1283_vm1, %v1087_v30 }
  0x3d   :  { %1095 = vmatprep.subr.msk.bf16.mxu0 %vm1283_vm1, %v1093_v35 }
  0x44   :  { %1098 = vmatpush3.bf16.xpose.msk.msra.mxu0 %vm1283_vm1, %v1093_v35 }
  0x4b   :  { %979 = vmatmul.mubr.msk.f32.vlgmr.msra.gmra.mrb[0].mxu0 %vm179_vm0, %v124_v5 }
  0x4c   :  { %981 = vmatprep.mubr.msk.f32.mxu0 %vm179_vm0, %v125_v36 }
  0x4f   :  { %982 = vmatmul.mubr.msk.f32.gmra.mrb[2].mxu0 %vm179_vm0, %v126_v37  ;;  %v496_v37 = vld [vmem:[%s1537_s7 + $0x8] sm:$0xff] }
  0x50   :  { %984 = vmatprep.mubr.msk.f32.mxu0 %vm179_vm0, %v127_v21  ;;  %v497_v21 = vld [vmem:[%s1537_s7 + $0x10] sm:$0xff] }
  0x53   :  { %985 = vmatmul.mubr.msk.f32.gmra.mrb[4].mxu0 %vm179_vm0, %v128_v38  ;;  %v498_v38 = vld [vmem:[%s1537_s7 + $0x18] sm:$0xff] }
  0x54   :  { %987 = vmatprep.mubr.msk.f32.mxu0 %vm179_vm0, %v129_v39  ;;  %v625_v39 = vld [vmem:[%s1539_s9] sm:$0xff] }
  0x57   :  { %988 = vmatmul.mubr.msk.f32.gmra.mrb[6].mxu0 %vm179_vm0, %v130_v40 }
  0x84   :  { %v152_v43 = vpop.permute.xlu1 %151 }
  0x86   :  { %v142_v42 = vpop.permute.xlu0 %141 }
  0x88   :  { %v157_v45 = vpop.permute.xlu1 %156 }
  0x8a   :  { %v147_v44 = vpop.permute.xlu0 %146 }
  0x8e   :  { %v167_v55 = vpop.permute.xlu1 %166  ;;  %v162_v58 = vpop.permute.xlu0 %161 }
  0x92   :  { %v177_v4 = vpop.permute.xlu1 %176  ;;  %v172_v8 = vpop.permute.xlu0 %171 }
  0x96   :  { %v381_v20 = vpop.permute.xlu1 %380  ;;  %v376_v22 = vpop.permute.xlu0 %375 }
  0x9a   :  { %v391_v28 = vpop.permute.xlu1 %390  ;;  %v386_v31 = vpop.permute.xlu0 %385 }
  0x9e   :  { %v511_v40 = vpop.permute.xlu1 %510  ;;  %v506_v41 = vpop.permute.xlu0 %505 }
 0x11e   :  { %v980_v46 = vpop.f32.mrb[0].mxu0 }
 0x11f   :  { %v324_v47 = vadd.f32 %v980_v46, %v147_v44  ;;  %v318_v48 = vpop.f32.mrb[1].mxu0 }
 0x120   :  { %v319_v49 = vadd.f32 %v318_v48, %v142_v42 }
 0x121   :  { %v358_v50 = vmax.f32 %v324_v47, 0.0  ;;  %v521_v47 = vpop.permute.xlu1 %520 }
 0x122   :  { %v357_v51 = vmax.f32 %v319_v49, 0.0  ;;  %v983_v52 = vpop.f32.mrb[2].mxu0 }
 0x123   :  { %v334_v53 = vadd.f32 %v983_v52, %v157_v45  ;;  %v328_v54 = vpop.f32.mrb[3].mxu0 }
 0x124   :  { %v329_v56 = vadd.f32 %v328_v54, %v152_v43  ;;  %v1099_v57 = vpack.c.bf16 %v358_v50, %v357_v51  ;;  %v516_v50 = vpop.permute.xlu0 %515 }
 0x125   :  { %v360_v59 = vmax.f32 %v334_v53, 0.0 }
 0x126   :  { %v359_v60 = vmax.f32 %v329_v56, 0.0  ;;  %v986_v61 = vpop.f32.mrb[4].mxu0  ;;  %1100 = vmatprep.subr.bf16.mxu1 %v1099_v57 }
 0x127   :  { %v344_v62 = vadd.f32 %v986_v61, %v167_v55  ;;  %v338_v63 = vpop.f32.mrb[5].mxu0  ;;  %1102 = vmatpush3.bf16.msra.mxu1 %v1099_v57  ;;  %v1169_v61 = vmov 0.0|0.0  }
 0x128   :  { %v1103_v0 = vpack.c.bf16 %v360_v59, %v359_v60  ;;  %v339_v1 = vadd.f32 %v338_v63, %v162_v58  ;;  %v626_v58 = vld [vmem:[%s1539_s9 + $0x8] sm:$0xff]  ;;  %v627_v59 = vld [vmem:[%s1539_s9 + $0x10] sm:$0xff]  ;;  %v628_v60 = vld [vmem:[%s1539_s9 + $0x18] sm:$0xff]  ;;  %v641_v63 = vpop.permute.xlu1 %640 }
 0x129   :  { %v362_v3 = vmax.f32 %v344_v62, 0.0  ;;  %v1171_v62 = vmov 0.0  }
 0x12a   :  { %v361_v6 = vmax.f32 %v339_v1, 0.0  ;;  %v989_v7 = vpop.f32.mrb[6].mxu0  ;;  %1104 = vmatprep.subr.bf16.mxu1 %v1103_v0 }
 0x12b   :  { %v354_v9 = vadd.f32 %v989_v7, %v177_v4  ;;  %v348_v10 = vpop.f32.mrb[7].mxu0  ;;  %1106 = vmatpush3.bf16.msra.mxu1 %v1103_v0  ;;  %v636_v0 = vpop.permute.xlu0 %635 }
 0x12c   :  { %v1107_v11 = vpack.c.bf16 %v362_v3, %v361_v6  ;;  %v349_v12 = vadd.f32 %v348_v10, %v172_v8  ;;  %v651_v8 = vpop.permute.xlu1 %650 }
 0x12d   :  { %v364_v13 = vmax.f32 %v354_v9, 0.0 }
 0x12e   :  { %v363_v14 = vmax.f32 %v349_v12, 0.0  ;;  %1108 = vmatprep.subr.bf16.mxu1 %v1107_v11 }
 0x12f   :  { %1110 = vmatpush3.bf16.msra.mxu1 %v1107_v11  ;;  %v646_v11 = vpop.permute.xlu0 %645 }
 0x130   :  { %v1111_v15 = vpack.c.bf16 %v364_v13, %v363_v14 }
 0x132   :  { %1112 = vmatprep.subr.bf16.mxu1 %v1111_v15 }
 0x133   :  { %1114 = vmatpush3.bf16.msra.mxu1 %v1111_v15 }
 0x136   :  { %1007 = vmatmul.mubr.msk.f32.vlgmr.msra.gmra.mrb[0].mxu1 %vm393_vm2, %v366_v16 }
 0x137   :  { %1009 = vmatprep.mubr.msk.f32.mxu1 %vm393_vm2, %v367_v17 }
 0x13a   :  { %1010 = vmatmul.mubr.msk.f32.gmra.mrb[2].mxu1 %vm393_vm2, %v368_v18 }
 0x13b   :  { %1020 = vmatprep.mubr.msk.f32.mxu1 %vm523_vm3, %v495_v19  ;;  %v754_v19 = vld [vmem:[%s1541_s11] sm:$0x1f] }
 0x209   :  { %v1008_v23 = vpop.f32.mrb[0].mxu1 }
 0x20a   :  { %v478_v24 = vadd.f32 %v1008_v23, %v381_v20  ;;  %v472_v25 = vpop.f32.mrb[1].mxu1  ;;  %v759_v20 = vpop.permute.xlu0 %758 }
 0x20b   :  { %v473_v26 = vadd.f32 %v472_v25, %v376_v22 }
 0x20c   :  { %v492_v27 = vmax.f32 %v478_v24, 0.0 }
 0x20d   :  { %v491_v29 = vmax.f32 %v473_v26, 0.0  ;;  %v1011_v30 = vpop.f32.mrb[2].mxu1 }
 0x20e   :  { %v488_v32 = vadd.f32 %v1011_v30, %v391_v28  ;;  %v482_v2 = vpop.f32.mrb[3].mxu1 }
 0x20f   :  { %v1115_v33 = vpack.c.bf16 %v492_v27, %v491_v29  ;;  %v483_v34 = vadd.f32 %v482_v2, %v386_v31 }
 0x210   :  { %v494_v35 = vmax.f32 %v488_v32, 0.0 }
 0x211   :  { %v493_v5 = vmax.f32 %v483_v34, 0.0  ;;  %1116 = vmatprep.subr.bf16.mxu1 %v1115_v33 }
 0x212   :  { %1118 = vmatpush3.bf16.msra.mxu1 %v1115_v33 }
 0x213   :  { %v1119_v36 = vpack.c.bf16 %v494_v35, %v493_v5 }
 0x215   :  { %1120 = vmatprep.subr.bf16.mxu1 %v1119_v36 }
 0x216   :  { %1122 = vmatpush3.bf16.msra.mxu1 %v1119_v36 }
 0x219   :  { %1021 = vmatmul.mubr.msk.f32.vlgmr.msra.gmra.mrb[4].mxu1 %vm523_vm3, %v496_v37 }
 0x21a   :  { %1023 = vmatprep.mubr.msk.f32.mxu1 %vm523_vm3, %v497_v21 }
 0x21d   :  { %1024 = vmatmul.mubr.msk.f32.gmra.mrb[6].mxu1 %vm523_vm3, %v498_v38 }
 0x21e   :  { %1034 = vmatprep.mubr.msk.f32.mxu1 %vm523_vm3, %v625_v39 }
 0x2ec   :  { %v1022_v42 = vpop.f32.mrb[4].mxu1 }
 0x2ed   :  { %v608_v43 = vadd.f32 %v1022_v42, %v511_v40  ;;  %v602_v44 = vpop.f32.mrb[5].mxu1 }
 0x2ee   :  { %v603_v45 = vadd.f32 %v602_v44, %v506_v41 }
 0x2ef   :  { %v622_v46 = vmax.f32 %v608_v43, 0.0 }
 0x2f0   :  { %v621_v48 = vmax.f32 %v603_v45, 0.0  ;;  %v1025_v49 = vpop.f32.mrb[6].mxu1 }
 0x2f1   :  { %v618_v51 = vadd.f32 %v1025_v49, %v521_v47  ;;  %v612_v52 = vpop.f32.mrb[7].mxu1 }
 0x2f2   :  { %v1123_v53 = vpack.c.bf16 %v622_v46, %v621_v48  ;;  %v613_v54 = vadd.f32 %v612_v52, %v516_v50 }
 0x2f3   :  { %v624_v55 = vmax.f32 %v618_v51, 0.0 }
 0x2f4   :  { %v623_v56 = vmax.f32 %v613_v54, 0.0  ;;  %1124 = vmatprep.subr.bf16.mxu1 %v1123_v53 }
 0x2f5   :  { %1126 = vmatpush3.bf16.msra.mxu1 %v1123_v53 }
 0x2f6   :  { %v1127_v57 = vpack.c.bf16 %v624_v55, %v623_v56 }
 0x2f8   :  { %1128 = vmatprep.subr.bf16.mxu1 %v1127_v57 }
 0x2f9   :  { %1130 = vmatpush3.bf16.msra.mxu1 %v1127_v57 }
 0x2fa   :  { %1131 = vmatprep.subr.bf16.mxu1 %v1169_v61 }
 0x2fc   :  { %1035 = vmatmul.mubr.msk.f32.vlgmr.msra.gmra.mrb[8].mxu1 %vm523_vm3, %v626_v58 }
 0x2fd   :  { %1037 = vmatprep.mubr.msk.f32.mxu1 %vm523_vm3, %v627_v59 }
 0x300   :  { %1038 = vmatmul.mubr.msk.f32.gmra.mrb[10].mxu1 %vm523_vm3, %v628_v60 }
 0x301   :  { %1048 = vmatprep.mubr.msk.f32.mxu1 %vm1170_vm4, %v1171_v62 }
 0x3cf   :  { %v1036_v1 = vpop.f32.mrb[8].mxu1 }
 0x3d0   :  { %v737_v3 = vadd.f32 %v1036_v1, %v641_v63  ;;  %v731_v4 = vpop.f32.mrb[9].mxu1 }
 0x3d1   :  { %v732_v6 = vadd.f32 %v731_v4, %v636_v0 }
 0x3d2   :  { %v751_v7 = vmax.f32 %v737_v3, 0.0 }
 0x3d3   :  { %v750_v9 = vmax.f32 %v732_v6, 0.0  ;;  %v1039_v10 = vpop.f32.mrb[10].mxu1 }
 0x3d4   :  { %v747_v12 = vadd.f32 %v1039_v10, %v651_v8  ;;  %v741_v13 = vpop.f32.mrb[11].mxu1 }
 0x3d5   :  { %v1132_v14 = vpack.c.bf16 %v751_v7, %v750_v9  ;;  %v742_v15 = vadd.f32 %v741_v13, %v646_v11 }
 0x3d6   :  { %v753_v16 = vmax.f32 %v747_v12, 0.0 }
 0x3d7   :  { %v752_v17 = vmax.f32 %v742_v15, 0.0  ;;  %1133 = vmatpush3.bf16.msra.mxu1 %v1132_v14 }
 0x3d8   :  { %1134 = vmatprep.subr.bf16.mxu1 %v1169_v61 }
 0x3d9   :  { %v1135_v18 = vpack.c.bf16 %v753_v16, %v752_v17 }
 0x3db   :  { %1136 = vmatpush3.bf16.msra.mxu1 %v1135_v18 }
 0x3de   :  { %1049 = vmatmul.mubr.msk.f32.vlgmr.msra.gmra.mrb[12].mxu1 %vm523_vm3, %v754_v19 }
 0x4b1   :  { %v830_v22 = vpop.f32.mrb[12].mxu1 }
 0x4b2   :  { %v831_v23 = vadd.f32 %v830_v22, %v759_v20  ;;  %v1050_v24 = vpop.f32.mrb[13].mxu1 }
 0x4b4   :  { %v834_v25 = vmax.f32 %v831_v23, 0.0 }
 0x4b6   :  { %835 = vst [vmem:[#allocation2] sm:$0x1f] %v834_v25 }
 0x4b7   :  { %1155 = shalt.err (!%p1152_p4)
}
 0x4b8   :  { %s1156_s18 = scalar_lea.hbm %s1543_s13, 128 }
 0x4b9   :  { %p1157_p5 = scmp.ne.s32.totalorder %s1543_s13, %s1156_s18  ;;  %p1160_p6 = scmp.lt.u32.totalorder %s1156_s18, %s1543_s13 }
 0x4bb   :  { %p1162_p7 = pnand %p1160_p6, %p1157_p5 }
 0x4bd   :  { %1165 = shalt.err (!%p1162_p7)
}
 0x4be   :  { %845 = dma.vmem_to_hbm [thread:$0]  %s843_s16, 128, %s1543_s13, [#allocation3]  }
 0x4bf   :  { %1166 = dma.done.wait [#allocation3], 128  }
 0x4c0   :  { %1167 = vsyncadd [#allocation3], 4294967168 }
 0x4c1   :  { %849 = vsyncpa [#allocation3], 1 }

</bundles_post_ra>
